<compile_context>
chip_gen: v6e
topology: v6e:2x2x1
jax: 0.10.0
libtpu: 0.0.40
codegen_flags: <defaults>
</compile_context>

<pallas_src>
import functools

import jax
import jax.numpy as jnp
import numpy as np
from jax.experimental import pallas as pl
from jax.experimental.pallas import tpu as pltpu

HIDDEN = 128
PAD_IN = 16    # padded state_dim: keeps the bf16 weight slab (16,128)-tile aligned
PAD_OUT = 128  # padded action_dim: lane-dense, unmasked output stores

# Row offsets of the three weight matrices inside the packed bf16 slab.
# All offsets are multiples of 16, i.e. bf16 (16,128) tile boundaries.
W1_ROW0, W1_ROW1 = 0, PAD_IN                        # (16, 128)
W2_ROW0, W2_ROW1 = PAD_IN, PAD_IN + HIDDEN          # (128, 128)
W3_ROW0, W3_ROW1 = PAD_IN + HIDDEN, PAD_IN + 2 * HIDDEN  # (128, 128)
W_SLAB_ROWS = PAD_IN + 2 * HIDDEN                   # 272


def qnetwork_kernel(x_ref, w_ref, b_ref, o_ref):
    # Bias slab (8, 128) f32: row 0 = b1, row 1 = b2, row 2 = b3 (zero padded).
    b1 = b_ref[0:1, :]
    b2 = b_ref[1:2, :]
    b3 = b_ref[2:3, :]

    # Static, 16-row-aligned slices of the VMEM-resident packed weight slab.
    w1 = w_ref[W1_ROW0:W1_ROW1, :]   # (16, 128)  bf16 (rows >= state_dim are zero)
    w2 = w_ref[W2_ROW0:W2_ROW1, :]   # (128, 128) bf16
    w3 = w_ref[W3_ROW0:W3_ROW1, :]   # (128, 128) bf16 (cols >= action_dim are zero)

    x = x_ref[...].astype(jnp.bfloat16)  # (tb, 16), feature-padded with zeros

    # Layer 1: Linear(state_dim -> 128) + ReLU.  bf16 MXU operands, f32
    # accumulation, f32 elementwise (v5e-friendly).  Correctness of the padded
    # K lanes relies on BOTH the padded x columns and padded w1 rows being 0.
    h1 = jnp.dot(x, w1, preferred_element_type=jnp.float32)
    h1 = jnp.maximum(h1 + b1, 0.0)

    # Layer 2: Linear(128 -> 128) + ReLU.
    h2 = jnp.dot(h1.astype(jnp.bfloat16), w2, preferred_element_type=jnp.float32)
    h2 = jnp.maximum(h2 + b2, 0.0)

    # Layer 3: Linear(128 -> action_dim), lane-dense (tb, 128) store.
    h3 = jnp.dot(h2.astype(jnp.bfloat16), w3, preferred_element_type=jnp.float32)
    o_ref[...] = (h3 + b3).astype(o_ref.dtype)


def prepare_qnetwork_params(w1, b1, w2, b2, w3, b3):
    """Pack the QNetwork parameters ONCE into kernel-ready slabs.

    Weights are stored (in, out) (transposed vs. torch's nn.Linear.weight).
    Returns (weight_slab bf16 (272,128), bias_slab f32 (8,128), action_dim).
    Zero padding of unused rows/cols is required for correctness.
    """
    state_dim = w1.shape[0]
    action_dim = w3.shape[1]
    assert w1.shape == (state_dim, HIDDEN)
    assert w2.shape == (HIDDEN, HIDDEN)
    assert w3.shape == (HIDDEN, action_dim)
    assert state_dim <= PAD_IN and action_dim <= PAD_OUT

    w_slab = jnp.zeros((W_SLAB_ROWS, HIDDEN), jnp.bfloat16)
    w_slab = w_slab.at[:state_dim, :].set(w1.astype(jnp.bfloat16))
    w_slab = w_slab.at[W2_ROW0:W2_ROW1, :].set(w2.astype(jnp.bfloat16))
    w_slab = w_slab.at[W3_ROW0:W3_ROW1, :action_dim].set(w3.astype(jnp.bfloat16))

    b_slab = (jnp.zeros((8, PAD_OUT), jnp.float32)
              .at[0, :HIDDEN].set(b1.reshape(-1))
              .at[1, :HIDDEN].set(b2.reshape(-1))
              .at[2, :action_dim].set(b3.reshape(-1)))
    return w_slab, b_slab, action_dim


def _round_up(x, m):
    return ((x + m - 1) // m) * m


def _choose_batch_tiling(batch):
    """Pick (tile_rows, padded_batch).  1 tile for tiny B, 2 tiles otherwise
    (feeds both v7x TensorCores; cheap extra step on 1-TC v5e/v6e), and
    512-row tiles for very large replay batches."""
    if batch <= 8:
        tb = _round_up(batch, 8)
        return tb, tb
    if batch <= 1024:
        tb = _round_up((_round_up(batch, 8) + 1) // 2, 8)
        return tb, 2 * tb
    tb = 512
    return tb, _round_up(batch, tb)


@functools.partial(jax.jit, static_argnames=("action_dim",))
def qnetwork_forward(x, w_slab, b_slab, action_dim):
    """x: (B, state_dim) f32; slabs from prepare_qnetwork_params().
    Returns (B, action_dim) f32 — same math as the PyTorch forward (modulo
    bf16 weight storage with f32 accumulation)."""
    B, state_dim = x.shape
    assert state_dim <= PAD_IN

    tb, Bp = _choose_batch_tiling(B)
    grid = (Bp // tb,)

    # Zero-pad x to (Bp, PAD_IN).  Zero fill is correctness-relevant: padded x
    # columns multiply the (zero) padded w1 rows.
    xp = jnp.zeros((Bp, PAD_IN), jnp.float32).at[:B, :state_dim].set(
        x.astype(jnp.float32))

    flops = 2 * Bp * (PAD_IN * HIDDEN + HIDDEN * HIDDEN + HIDDEN * PAD_OUT)
    bytes_accessed = (xp.size * 4 + w_slab.size * 2 + b_slab.size * 4
                      + Bp * PAD_OUT * 4)

    out_padded = pl.pallas_call(
        qnetwork_kernel,
        out_shape=jax.ShapeDtypeStruct((Bp, PAD_OUT), jnp.float32),
        grid=grid,
        in_specs=[
            pl.BlockSpec((tb, PAD_IN), lambda i: (i, 0)),          # x: batch-tiled
            pl.BlockSpec((W_SLAB_ROWS, HIDDEN), lambda i: (0, 0)),  # packed weights, VMEM-resident
            pl.BlockSpec((8, PAD_OUT), lambda i: (0, 0)),           # stacked biases
        ],
        out_specs=pl.BlockSpec((tb, PAD_OUT), lambda i: (i, 0)),
        compiler_params=pltpu.CompilerParams(
            dimension_semantics=("parallel",)),
        cost_estimate=pl.CostEstimate(
            flops=flops, transcendentals=0, bytes_accessed=bytes_accessed),
    )(xp, w_slab, b_slab)

    return out_padded[:B, :action_dim]


def init_linear_params(key, fan_in, fan_out):
    """Mimics torch.nn.Linear default init: U(-1/sqrt(fan_in), 1/sqrt(fan_in)).
    Weight returned as (fan_in, fan_out) so the kernel computes x @ W."""
    kw, kb = jax.random.split(key)
    bound = 1.0 / np.sqrt(fan_in)
    w = jax.random.uniform(kw, (fan_in, fan_out), jnp.float32, -bound, bound)
    b = jax.random.uniform(kb, (1, fan_out), jnp.float32, -bound, bound)
    return w, b


def ref_forward(x, w1, b1, w2, b2, w3, b3):
    """Pure-JAX reference with the same bf16-weight / f32-accumulate math."""
    w1b, w2b, w3b = (w.astype(jnp.bfloat16) for w in (w1, w2, w3))
    h = jnp.dot(x.astype(jnp.bfloat16), w1b,
                preferred_element_type=jnp.float32) + b1
    h = jnp.maximum(h, 0.0)
    h = jnp.dot(h.astype(jnp.bfloat16), w2b,
                preferred_element_type=jnp.float32) + b2
    h = jnp.maximum(h, 0.0)
    return jnp.dot(h.astype(jnp.bfloat16), w3b,
                   preferred_element_type=jnp.float32) + b3


if __name__ == "__main__":
    # CartPole-v1: state_dim = 4, action_dim = 2, hidden = 128 (fixed by the
    # module).  Small batch of 16 -> two 8-row tiles, exercising the batch grid.
    state_dim, action_dim, hidden = 4, 2, 128
    batch = 16

    root = jax.random.PRNGKey(0)
    k_x, k1, k2, k3 = jax.random.split(root, 4)

    x = jax.random.normal(k_x, (batch, state_dim), jnp.float32)
    w1, b1 = init_linear_params(k1, state_dim, hidden)
    w2, b2 = init_linear_params(k2, hidden, hidden)
    w3, b3 = init_linear_params(k3, hidden, action_dim)

    # Parameter prep is done ONCE, outside the per-step forward.
    w_slab, b_slab, act_dim = prepare_qnetwork_params(w1, b1, w2, b2, w3, b3)
    w_slab, b_slab = jax.block_until_ready((w_slab, b_slab))

    out = qnetwork_forward(x, w_slab, b_slab, action_dim=act_dim)
    out = jax.block_until_ready(out)

    ref = jax.block_until_ready(ref_forward(x, w1, b1, w2, b2, w3, b3))
    np.testing.assert_allclose(np.asarray(out), np.asarray(ref),
                               rtol=2e-2, atol=2e-2)

    assert out.shape == (batch, action_dim)
    print("KERNEL_OK")
</pallas_src>

<mosaic_0001>
module attributes {stable_mosaic.version = 11 : i64} {
  func.func @qnetwork_kernel(%arg0: i32, %arg1: memref<8x16xf32, #tpu.memory_space<vmem>>, %arg2: memref<272x128xbf16, #tpu.memory_space<vmem>>, %arg3: memref<8x128xf32, #tpu.memory_space<vmem>>, %arg4: memref<8x128xf32, #tpu.memory_space<vmem>>) attributes {dimension_semantics = [#tpu.dimension_semantics<parallel>], iteration_bounds = array<i64: 2>, scalar_prefetch = 0 : i64, scratch_operands = 0 : i64, tpu.core_type = #tpu.core_type<tc>, window_params = [{transform_indices = @transform_0, window_bounds = array<i64: 8, 16>}, {pipeline_mode = #tpu.pipeline_mode<synchronous>, transform_indices = @transform_1, window_bounds = array<i64: 272, 128>}, {pipeline_mode = #tpu.pipeline_mode<synchronous>, transform_indices = @transform_2, window_bounds = array<i64: 8, 128>}, {transform_indices = @transform_3, window_bounds = array<i64: 8, 128>}]} {
    %c0 = arith.constant 0 : index
    %c0_0 = arith.constant 0 : index
    %0 = vector.load %arg3[%c0, %c0_0] : memref<8x128xf32, #tpu.memory_space<vmem>>, vector<1x128xf32>
    %c1 = arith.constant 1 : index
    %c0_1 = arith.constant 0 : index
    %1 = vector.load %arg3[%c1, %c0_1] : memref<8x128xf32, #tpu.memory_space<vmem>>, vector<1x128xf32>
    %c2 = arith.constant 2 : index
    %c0_2 = arith.constant 0 : index
    %2 = vector.load %arg3[%c2, %c0_2] : memref<8x128xf32, #tpu.memory_space<vmem>>, vector<1x128xf32>
    %c0_3 = arith.constant 0 : index
    %c0_4 = arith.constant 0 : index
    %3 = vector.load %arg2[%c0_3, %c0_4] : memref<272x128xbf16, #tpu.memory_space<vmem>>, vector<16x128xbf16>
    %c16 = arith.constant 16 : index
    %c0_5 = arith.constant 0 : index
    %4 = vector.load %arg2[%c16, %c0_5] : memref<272x128xbf16, #tpu.memory_space<vmem>>, vector<128x128xbf16>
    %c144 = arith.constant 144 : index
    %c0_6 = arith.constant 0 : index
    %5 = vector.load %arg2[%c144, %c0_6] : memref<272x128xbf16, #tpu.memory_space<vmem>>, vector<128x128xbf16>
    %c0_7 = arith.constant 0 : index
    %c0_8 = arith.constant 0 : index
    %6 = vector.load %arg1[%c0_7, %c0_8] : memref<8x16xf32, #tpu.memory_space<vmem>>, vector<8x16xf32>
    %7 = arith.truncf %6 : vector<8x16xf32> to vector<8x16xbf16>
    %cst = arith.constant dense<0.000000e+00> : vector<8x128xf32>
    %8 = tpu.matmul %7, %3, %cst {dimension_numbers = #tpu.dot_dimension_numbers<[1], [0], [0], [1], [0, 0, 1, 1], [], []>} : vector<8x16xbf16>, vector<16x128xbf16>, vector<8x128xf32> -> vector<8x128xf32>
    %9 = vector.broadcast %0 : vector<1x128xf32> to vector<8x128xf32>
    %10 = arith.addf %8, %9 : vector<8x128xf32>
    %cst_9 = arith.constant 0.000000e+00 : f32
    %11 = vector.broadcast %cst_9 : f32 to vector<8x128xf32>
    %12 = arith.maximumf %10, %11 : vector<8x128xf32>
    %13 = arith.truncf %12 : vector<8x128xf32> to vector<8x128xbf16>
    %cst_10 = arith.constant dense<0.000000e+00> : vector<8x128xf32>
    %14 = tpu.matmul %13, %4, %cst_10 {dimension_numbers = #tpu.dot_dimension_numbers<[1], [0], [0], [1], [0, 0, 1, 1], [], []>} : vector<8x128xbf16>, vector<128x128xbf16>, vector<8x128xf32> -> vector<8x128xf32>
    %15 = vector.broadcast %1 : vector<1x128xf32> to vector<8x128xf32>
    %16 = arith.addf %14, %15 : vector<8x128xf32>
    %cst_11 = arith.constant 0.000000e+00 : f32
    %17 = vector.broadcast %cst_11 : f32 to vector<8x128xf32>
    %18 = arith.maximumf %16, %17 : vector<8x128xf32>
    %19 = arith.truncf %18 : vector<8x128xf32> to vector<8x128xbf16>
    %cst_12 = arith.constant dense<0.000000e+00> : vector<8x128xf32>
    %20 = tpu.matmul %19, %5, %cst_12 {dimension_numbers = #tpu.dot_dimension_numbers<[1], [0], [0], [1], [0, 0, 1, 1], [], []>} : vector<8x128xbf16>, vector<128x128xbf16>, vector<8x128xf32> -> vector<8x128xf32>
    %21 = vector.broadcast %2 : vector<1x128xf32> to vector<8x128xf32>
    %22 = arith.addf %20, %21 : vector<8x128xf32>
    %c0_13 = arith.constant 0 : index
    %c0_14 = arith.constant 0 : index
    %23 = vector.load %arg4[%c0_13, %c0_14] : memref<8x128xf32, #tpu.memory_space<vmem>>, vector<8x128xf32>
    tpu.vector_store %arg4[%c0_13, %c0_14], %22 {strides = array<i32>} : memref<8x128xf32, #tpu.memory_space<vmem>>, vector<8x128xf32>,
    return
  }
  func.func @transform_0(%arg0: i32) -> (i32, i32) {
    %c0_i32 = arith.constant 0 : i32
    %c0_i32_0 = arith.constant 0 : i32
    return %arg0, %c0_i32 : i32, i32
  }
  func.func @transform_1(%arg0: i32) -> (i32, i32) {
    %c0_i32 = arith.constant 0 : i32
    %c0_i32_0 = arith.constant 0 : i32
    %c0_i32_1 = arith.constant 0 : i32
    return %c0_i32, %c0_i32_0 : i32, i32
  }
  func.func @transform_2(%arg0: i32) -> (i32, i32) {
    %c0_i32 = arith.constant 0 : i32
    %c0_i32_0 = arith.constant 0 : i32
    %c0_i32_1 = arith.constant 0 : i32
    return %c0_i32, %c0_i32_0 : i32, i32
  }
  func.func @transform_3(%arg0: i32) -> (i32, i32) {
    %c0_i32 = arith.constant 0 : i32
    %c0_i32_0 = arith.constant 0 : i32
    return %arg0, %c0_i32 : i32, i32
  }
}

</mosaic_0001>

<bundles_post_ra>
// kernel: qnetwork_forward.1
= control target key start
LH: loop header
LB: loop body
LE: loop exit
PB: predicated region body
PF: predicated region fallthrough
CT: control target
= control target key end

     0   :  { %8 = vsyncpa [#allocation3], 0  ;;  %s730_s12 = smov 0   ;;  %s808_s0 = inlined_call_operand.vmem [shape: f32[16,16], index: 0, kind: input, shape index: {}]   ;;  %s809_s1 = inlined_call_operand.hbm [shape: bf16[272,128], index: 1, kind: input, shape index: {}]   ;;  %s810_s2 = inlined_call_operand.vmem [shape: f32[8,128], index: 2, kind: input, shape index: {}]   ;;  %s811_s3 = inlined_call_operand.vmem [shape: f32[16,128], index: 3, kind: output, shape index: {}]  }
   0x1 LB: > { %s736_s13 = sadd.s32 4294967295, %s703_s12   ;;  %p531_p0 = scmp.ge.s32.totalorder %s703_s12, 1  ;;  %s703_s12 = sphi %s730_s12, %s14_s12  }
   0x2   : > { %p113_p1 = scmp.lt.s32.totalorder %s703_s12, 3  ;;  %s705_s14 = smov [#allocation2]  }
   0x3   : > { %s125_s15 = sshll.u32 %s705_s14, 4  ;;  %p635_p3 = scmp.eq.s32.totalorder %s736_s13, 0  ;;  %s126_s15 = int_to_ptr.vmem [resolvable:$true] %s125_s15 }
   0x4   : > { %p740_p2 = pnand %p531_p0, %p113_p1  ;;  %s678_s17 = scalar_lea.vmem %s126_s15, 2176 }
   0x5   : > { %p679_p7 = scmp.ne.s32.totalorder %s126_s15, %s678_s17  ;;  %p686_p10 = scmp.lt.s32.totalorder %s126_s15, %s126_s15 }
   0x6   : > { %p631_p4 = pneg %p740_p2  ;;  %p687_p11 = scmp.lt.s32.totalorder %s678_s17, %s678_s17 }
   0x8   : > { %p632_p5 = pnand %p635_p3, %p631_p4  ;;  %p688_p12 = por %p687_p11, %p686_p10 }
   0xa   : > { %p669_p6 = pneg %p632_p5 }
   0xc   : > { %p681_p8 = pnand %p679_p7, %p669_p6 }
   0xe   : > { %p682_p9 = pneg %p681_p8 }
  0x10   : > { %p689_p13 = pnand %p688_p12, %p682_p9 }
  0x12   : > { %692 = shalt.err (!%p689_p13)
}
  0x13   : > { %s706_s18 = smov 64   ;;  %s707_s19 = smov 4  }
  0x14   : > { %634 = dma.hbm_to_vmem [thread:$0]  (!%p632_p5), %s809_s1, 2176, %s126_s15, [#allocation3], %s706_s18, %s706_s18, %s707_s19  }
  0x15   : > { %151 = sbr.rel (%p740_p2) target bundleno = 632 (0x278), region = 32 }
  0x1a   : > { %698 = dma.done.wait (%p635_p3), [#allocation3], 2176  }
  0x1b   : > { %700 = vsyncadd (%p635_p3), [#allocation3], 4294965120  ;;  %p173_p0 = scmp.lt.s32.totalorder %s736_s13, 1  ;;  %v708_v0 = vmov 0.0   ;;  %vm709_vm0 = vmmov 0   ;;  %v650_v1 = vld [vmem:[#allocation2] sm:$0xff]  }
  0x1c   : > { %581 = vmatprep.subr.bf16.mxu0 %v708_v0  ;;  %583 = vmatprep.mubr.msk.bf16.mxu0 %vm709_vm0, %v708_v0  ;;  %vm231_vm1 = vcmask 130048   ;;  %v651_v4 = vld [vmem:[#allocation2 + $0x40] sm:$0xff]   ;;  %v652_v5 = vld [vmem:[#allocation2 + $0x38] sm:$0xff]   ;;  %v653_v6 = vld [vmem:[#allocation2 + $0x30] sm:$0xff]  }
  0x1d   : > { %s814_s13 = smov (!%p173_p0, %s736_s13), 1  ;;  %587 = vmatprep.subr.bf16.mxu1 %v708_v0  ;;  %603 = vmatprep.mubr.msk.bf16.mxu1 %vm709_vm0, %v708_v0  ;;  %v654_v7 = vld [vmem:[#allocation2 + $0x28] sm:$0xff]   ;;  %v655_v8 = vld [vmem:[#allocation2 + $0x20] sm:$0xff]   ;;  %v656_v9 = vld [vmem:[#allocation2 + $0x18] sm:$0xff]  }
  0x1e   : > { %s536_s22 = sshll.u32 %s814_s13, 3  ;;  %582 = vmatpush3.bf16.msra.mxu0 %v650_v1  ;;  %588 = vmatpush3.bf16.msra.mxu1 %v651_v4  ;;  %v657_v10 = vld [vmem:[#allocation2 + $0x10] sm:$0xff]   ;;  %v658_v11 = vld [vmem:[#allocation2 + $0x8] sm:$0xff]   ;;  %v659_v12 = vld [vmem:[#allocation2 + $0x80] sm:$0xff]  }
  0x1f   : > { %s176_s25 = scalar_lea.vmem %s808_s0, %s536_s22  ;;  %607 = vmatprep.subr.bf16.mxu0 %v708_v0  ;;  %589 = vmatprep.subr.bf16.mxu1 %v708_v0  ;;  %v660_v13 = vld [vmem:[#allocation2 + $0x78] sm:$0xff]   ;;  %v661_v14 = vld [vmem:[#allocation2 + $0x70] sm:$0xff]   ;;  %v662_v15 = vld [vmem:[#allocation2 + $0x68] sm:$0xff]   ;;  %s180_s7 = scalar_lea.vmem %s811_s3, %s536_s22 }
  0x20   : > { %v219_v2 = vld [vmem:[%s176_s25] sm:$0xff]  ;;  %v664_v17 = vld [vmem:[#allocation2 + $0x58] sm:$0xff]   ;;  %v665_v26 = vld [vmem:[#allocation2 + $0x50] sm:$0xff]  }
  0x21   : > { %v220_v3 = vpack.c.bf16 %v219_v2, %v219_v2  ;;  %v663_v16 = vld [vmem:[#allocation2 + $0x60] sm:$0xff]   ;;  %v666_v27 = vld [vmem:[#allocation2 + $0x48] sm:$0xff]  }
  0x22   : > { %590 = vmatpush3.bf16.msra.mxu1 %v652_v5  ;;  %v538_v18 = vld [vmem:[%s810_s2] ss:$0 sm:$0xff]  ;;  %v541_v28 = vld [vmem:[%s810_s2 + $0x1] ss:$0 sm:$0xff]  ;;  %v550_v36 = vld [vmem:[%s810_s2 + $0x2] ss:$0 sm:$0xff] }
  0x23   : > { %584 = vmatmul.mubr.msk.bf16.vlgmr.msra.gmra.mxu0 %vm231_vm1, %v220_v3  ;;  %591 = vmatprep.subr.bf16.mxu1 %v708_v0 }
  0x24   : > { %623 = vmatprep.mubr.msk.bf16.mxu0 %vm709_vm0, %v708_v0  ;;  %608 = vmatpush3.bf16.msra.mxu0 %v659_v12 }
  0x25   : > { %609 = vmatprep.subr.bf16.mxu0 %v708_v0 }
  0x26   : > { %592 = vmatpush3.bf16.msra.mxu1 %v653_v6 }
  0x27   : > { %593 = vmatprep.subr.bf16.mxu1 %v708_v0 }
  0x28   : > { %610 = vmatpush3.bf16.msra.mxu0 %v660_v13 }
  0x29   : > { %611 = vmatprep.subr.bf16.mxu0 %v708_v0 }
  0x2a   : > { %594 = vmatpush3.bf16.msra.mxu1 %v654_v7 }
  0x2b   : > { %595 = vmatprep.subr.bf16.mxu1 %v708_v0 }
  0x2c   : > { %612 = vmatpush3.bf16.msra.mxu0 %v661_v14 }
  0x2d   : > { %613 = vmatprep.subr.bf16.mxu0 %v708_v0 }
  0x2e   : > { %596 = vmatpush3.bf16.msra.mxu1 %v655_v8 }
  0x2f   : > { %597 = vmatprep.subr.bf16.mxu1 %v708_v0 }
  0x30   : > { %614 = vmatpush3.bf16.msra.mxu0 %v662_v15 }
  0x31   : > { %615 = vmatprep.subr.bf16.mxu0 %v708_v0 }
  0x32   : > { %598 = vmatpush3.bf16.msra.mxu1 %v656_v9 }
  0x33   : > { %599 = vmatprep.subr.bf16.mxu1 %v708_v0 }
  0x34   : > { %616 = vmatpush3.bf16.msra.mxu0 %v663_v16 }
  0x35   : > { %617 = vmatprep.subr.bf16.mxu0 %v708_v0 }
  0x36   : > { %600 = vmatpush3.bf16.msra.mxu1 %v657_v10 }
  0x37   : > { %601 = vmatprep.subr.bf16.mxu1 %v708_v0 }
  0x38   : > { %618 = vmatpush3.bf16.msra.mxu0 %v664_v17 }
  0x39   : > { %619 = vmatprep.subr.bf16.mxu0 %v708_v0 }
  0x3a   : > { %602 = vmatpush3.bf16.msra.mxu1 %v658_v11 }
  0x3c   : > { %620 = vmatpush3.bf16.msra.mxu0 %v665_v26 }
  0x3d   : > { %621 = vmatprep.subr.bf16.mxu0 %v708_v0 }
  0x40   : > { %622 = vmatpush3.bf16.msra.mxu0 %v666_v27 }
  0xe3   : > { %v269_v19 = vpop.f32.mrf.mxu0 }
  0xe4   : > { %v270_v20 = vadd.f32 %v538_v18, %v269_v19 }
  0xe5   : > { %v585_v21 = vpop.f32.mrf.mxu0 }
  0xe6   : > { %v275_v22 = vmax.f32 %v270_v20, 0.0 }
  0xe7   : > { %v272_v23 = vpop.f32.mrf.mxu0 }
  0xe8   : > { %v276_v24 = vpack.c.bf16 %v275_v22, %v275_v22 }
  0xe9   : > { %v586_v25 = vpop.f32.mrf.mxu0 }
  0xea   : > { %604 = vmatmul.mubr.bf16.vlgmr.msra.gmra.mxu1 %v276_v24 }
 0x1aa   : > { %v363_v29 = vpop.f32.mrf.mxu1 }
 0x1ab   : > { %v364_v30 = vadd.f32 %v541_v28, %v363_v29 }
 0x1ac   : > { %v605_v31 = vpop.f32.mrf.mxu1 }
 0x1ad   : > { %v369_v32 = vmax.f32 %v364_v30, 0.0 }
 0x1ae   : > { %v366_v33 = vpop.f32.mrf.mxu1 }
 0x1af   : > { %v370_v34 = vpack.c.bf16 %v369_v32, %v369_v32 }
 0x1b0   : > { %v606_v35 = vpop.f32.mrf.mxu1 }
 0x1b1   : > { %624 = vmatmul.mubr.bf16.vlgmr.msra.gmra.mxu0 %v370_v34 }
 0x271   : > { %v457_v37 = vpop.f32.mrf.mxu0 }
 0x272   : > { %v458_v38 = vadd.f32 %v550_v36, %v457_v37 }
 0x273   : > { %v625_v39 = vpop.f32.mrf.mxu0 }
 0x274   : > { %463 = vst [vmem:[%s180_s7] sm:$0xff] %v458_v38 }
 0x275   : > { %v460_v40 = vpop.f32.mrf.mxu0 }
 0x277   : > { %v626_v41 = vpop.f32.mrf.mxu0 }
 0x278 PF: > { %s14_s12 = sadd.s32 1, %s703_s12  }
 0x279   : > { %p11_p1 = scmp.ge.s32.totalorder %s14_s12, 4  }
 0x27b   :  { %13 = sbr.rel (!%p11_p1) target bundleno = 1 (0x1), region = 67 }
 0x280   :  { %483 = vsyncpa [#allocation3], 1 }
 0x281   :  { %485 = vsyncpa [#allocation3 + $0x1], 1 }

</bundles_post_ra>
